<compile_context>
chip_gen: v6e
topology: v6e:2x2x1
jax: 0.10.0
libtpu: 0.0.40
codegen_flags: <defaults>
</compile_context>

<pallas_src>
import math
import functools

import jax
import jax.numpy as jnp
from jax import lax
from jax.experimental import pallas as pl
from jax.experimental.pallas import tpu as pltpu


def _mha_kernel(q_ref, h_ref, wq_ref, wkv_ref, wo_ref, out_ref, *,
                n_heads, key_dim, val_dim, norm_factor, gs_valid, mxu_dtype):
    bt, nq, D = q_ref.shape
    _, gs, _ = h_ref.shape
    hk = n_heads * key_dim
    hv = n_heads * val_dim

    # (bt, s, D) -> (bt*s, D): nq/gs are padded to multiples of 8 in the
    # wrapper, so these leading-dim merges are layout no-ops.
    qflat = q_ref[...].reshape(bt * nq, D).astype(mxu_dtype)
    hflat = h_ref[...].reshape(bt * gs, D).astype(mxu_dtype)

    # Fused projections: one MXU matmul for Q, one for [K | V] (shared LHS).
    # The 1/sqrt(key_dim) scale is folded into Q (small) rather than the
    # (nq, gs) score tensor.
    Q = jnp.dot(qflat, wq_ref[...], preferred_element_type=jnp.float32) * norm_factor
    KV = jnp.dot(hflat, wkv_ref[...], preferred_element_type=jnp.float32)

    Qh_all = Q.astype(mxu_dtype).reshape(bt, nq, hk)
    Kh_all = KV[:, :hk].astype(mxu_dtype).reshape(bt, gs, hk)
    Vh_all = KV[:, hk:].astype(mxu_dtype).reshape(bt, gs, hv)

    # TODO(synk): replace this unrolled per-head loop with a head-batched
    #             dot_general; that needs a head-major relayout (non-leading
    #             batch dims), which is riskier to lower than H small dots.
    head_outs = []
    for hd in range(n_heads):
        Qh = Qh_all[:, :, hd * key_dim:(hd + 1) * key_dim]   # (bt, nq, kd)
        Kh = Kh_all[:, :, hd * key_dim:(hd + 1) * key_dim]   # (bt, gs, kd)
        Vh = Vh_all[:, :, hd * val_dim:(hd + 1) * val_dim]   # (bt, gs, vd)

        # Batched Q @ K^T without materializing a transpose of K
        # (single leading batch dim, contract last dims).
        s = lax.dot_general(Qh, Kh, (((2,), (2,)), ((0,), (0,))),
                            preferred_element_type=jnp.float32)   # (bt, nq, gs)
        if gs_valid < gs:   # static: mask key columns added by sublane padding
            col = lax.broadcasted_iota(jnp.int32, s.shape, 2)
            s = jnp.where(col < gs_valid, s, -1e30)

        # Softmax in f32; exact division (denominator >= 1 after max-subtract).
        m = jnp.max(s, axis=-1, keepdims=True)
        e = jnp.exp(s - m)
        attn = e / jnp.sum(e, axis=-1, keepdims=True)

        head_outs.append(
            lax.dot_general(attn.astype(mxu_dtype), Vh,
                            (((2,), (1,)), ((0,), (0,))),
                            preferred_element_type=jnp.float32))   # (bt, nq, vd)

    # Concatenate heads along lanes (head-major order matches
    # W_out.view(n_heads*val_dim, embed_dim)), one output-projection matmul.
    heads = (jnp.concatenate(head_outs, axis=-1)
             .reshape(bt * nq, hv).astype(mxu_dtype))
    out = jnp.dot(heads, wo_ref[...], preferred_element_type=jnp.float32)
    # TODO(synk): when embed_dim < 128, a lane-dense (bt, nq*embed) store would
    #             avoid masked vst; skipped (sublane->lane merge relayout).
    out_ref[...] = out.reshape(bt, nq, -1).astype(out_ref.dtype)


def _vmem_bytes_estimate(bt, nq, gs, D, hk, hv, embed):
    """Rough per-grid-step VMEM footprint (bytes)."""
    f32, bf16 = 4, 2
    io = 2 * f32 * (bt * nq * D + bt * gs * D + bt * nq * embed)     # 2x-buffered blocks
    w = 2 * bf16 * (D * hk + D * (hk + hv) + hv * embed)             # 2x-buffered weights
    act = f32 * (bt * nq * hk + bt * gs * (hk + hv)                  # Q, KV
                 + 3 * bt * nq * gs                                  # s / e / attn
                 + 2 * bt * nq * hv + bt * nq * embed)               # head outs, concat, out
    act += bf16 * (bt * nq * D + bt * gs * D
                   + bt * nq * (hk + hv) + bt * nq * hv)             # bf16 casts
    return int(1.25 * (io + w + act))


def _pick_batch_tile(B, nq, gs, D, hk, hv, embed, budget_bytes, rows_target=512):
    """Largest divisor of B that fits the VMEM budget, preferring the smallest
    one that reaches ~rows_target MXU LHS rows (bt*nq)."""
    divisors = [d for d in range(1, B + 1) if B % d == 0]
    fitting = [d for d in divisors
               if _vmem_bytes_estimate(d, nq, gs, D, hk, hv, embed) <= budget_bytes]
    if not fitting:
        return 1
    for d in fitting:
        if d * nq >= rows_target:
            return d
    return fitting[-1]


def multi_head_attention(q, h, W_query, W_key, W_val, W_out, *,
                         batch_tile=None, mxu_dtype=jnp.bfloat16,
                         vmem_budget_bytes=20 << 20):
    """q: (B, n_query, input_dim), h: (B, graph_size, input_dim)."""
    B, nq, D = q.shape
    _, gs, _ = h.shape
    n_heads, _, key_dim = W_query.shape
    val_dim = W_val.shape[-1]
    embed_dim = W_out.shape[-1]
    # The PyTorch module declares W_out as (n_heads, key_dim, embed_dim) but
    # contracts it against val_dim-sized head outputs — only valid when equal.
    assert W_out.shape[1] == val_dim, "module requires key_dim == val_dim"
    norm_factor = 1.0 / math.sqrt(key_dim)

    # Pad sequence dims to sublane multiples so in-kernel flattens are free.
    nq_pad = (-nq) % 8
    gs_pad = (-gs) % 8
    if nq_pad:
        q = jnp.pad(q, ((0, 0), (0, nq_pad), (0, 0)))
    if gs_pad:
        h = jnp.pad(h, ((0, 0), (0, gs_pad), (0, 0)))
    nq_p, gs_p = nq + nq_pad, gs + gs_pad

    hk = n_heads * key_dim
    hv = n_heads * val_dim

    # Flatten per-head weights so all heads are handled by single matmuls,
    # fuse [Wk | Wv] (shared LHS), and cast to the MXU dtype (bf16 default).
    Wq_flat = jnp.transpose(W_query, (1, 0, 2)).reshape(D, hk).astype(mxu_dtype)
    Wk_flat = jnp.transpose(W_key, (1, 0, 2)).reshape(D, hk)
    Wv_flat = jnp.transpose(W_val, (1, 0, 2)).reshape(D, hv)
    Wkv_flat = jnp.concatenate([Wk_flat, Wv_flat], axis=1).astype(mxu_dtype)
    Wo_flat = W_out.reshape(hv, embed_dim).astype(mxu_dtype)
    # TODO(synk): fuse [Wq | Wk | Wv] into a single matmul when h is q.

    if batch_tile is None:
        batch_tile = _pick_batch_tile(B, nq_p, gs_p, D, hk, hv, embed_dim,
                                      vmem_budget_bytes)
    assert B % batch_tile == 0

    est = _vmem_bytes_estimate(batch_tile, nq_p, gs_p, D, hk, hv, embed_dim)
    vmem_limit = int(min(max(32 << 20, 2 * est), 48 << 20))

    flops = (2 * B * nq_p * D * hk                       # Q projection
             + 2 * B * gs_p * D * (hk + hv)              # fused K/V projection
             + 2 * B * n_heads * nq_p * gs_p * key_dim   # Q K^T
             + 2 * B * n_heads * nq_p * gs_p * val_dim   # attn V
             + 2 * B * nq_p * hv * embed_dim)            # output projection
    bytes_accessed = (4 * (B * nq_p * D + B * gs_p * D + B * nq_p * embed_dim)
                      + 2 * (D * hk + D * (hk + hv) + hv * embed_dim))
    cost = pl.CostEstimate(flops=flops,
                           transcendentals=B * n_heads * nq_p * gs_p,
                           bytes_accessed=bytes_accessed)

    kernel = functools.partial(_mha_kernel, n_heads=n_heads, key_dim=key_dim,
                               val_dim=val_dim, norm_factor=norm_factor,
                               gs_valid=gs, mxu_dtype=mxu_dtype)

    out = pl.pallas_call(
        kernel,
        out_shape=jax.ShapeDtypeStruct((B, nq_p, embed_dim), q.dtype),
        grid=(B // batch_tile,),
        in_specs=[
            pl.BlockSpec((batch_tile, nq_p, D), lambda b: (b, 0, 0)),      # q
            pl.BlockSpec((batch_tile, gs_p, D), lambda b: (b, 0, 0)),      # h
            # Weights: constant block index -> DMA'd once, stay resident.
            pl.BlockSpec((D, hk), lambda b: (0, 0)),                       # Wq
            pl.BlockSpec((D, hk + hv), lambda b: (0, 0)),                  # [Wk|Wv]
            pl.BlockSpec((hv, embed_dim), lambda b: (0, 0)),               # Wo
        ],
        out_specs=pl.BlockSpec((batch_tile, nq_p, embed_dim), lambda b: (b, 0, 0)),
        compiler_params=pltpu.CompilerParams(
            dimension_semantics=("parallel",),
            vmem_limit_bytes=vmem_limit),
        cost_estimate=cost,
    )(q, h, Wq_flat, Wkv_flat, Wo_flat)

    if nq_pad:
        out = out[:, :nq, :]
    return out


def _reference(q, h, W_query, W_key, W_val, W_out):
    n_heads, _, key_dim = W_query.shape
    embed_dim = W_out.shape[-1]
    norm = 1.0 / math.sqrt(key_dim)
    Q = jnp.einsum('bqd,hdk->hbqk', q, W_query)
    K = jnp.einsum('bgd,hdk->hbgk', h, W_key)
    V = jnp.einsum('bgd,hdv->hbgv', h, W_val)
    compat = norm * jnp.einsum('hbqk,hbgk->hbqg', Q, K)
    attn = jax.nn.softmax(compat, axis=-1)
    heads = jnp.einsum('hbqg,hbgv->hbqv', attn, V)          # (H, B, nq, vd)
    B, nq = q.shape[0], q.shape[1]
    heads_p = jnp.transpose(heads, (1, 2, 0, 3)).reshape(B * nq, -1)
    out = heads_p @ W_out.reshape(-1, embed_dim)
    return out.reshape(B, nq, embed_dim)


if __name__ == "__main__":
    # Module config (small shapes)
    n_heads = 4
    input_dim = 32
    embed_dim = 32
    val_dim = embed_dim // n_heads
    key_dim = val_dim

    key = jax.random.PRNGKey(0)
    k_q, k_h, k_wq, k_wk, k_wv, k_wo = jax.random.split(key, 6)

    # Deterministic parameter init matching PyTorch: uniform(-stdv, stdv),
    # stdv = 1/sqrt(last_dim).
    def uinit(k, shape):
        stdv = 1.0 / math.sqrt(shape[-1])
        return jax.random.uniform(k, shape, jnp.float32, -stdv, stdv)

    W_query = uinit(k_wq, (n_heads, input_dim, key_dim))
    W_key = uinit(k_wk, (n_heads, input_dim, key_dim))
    W_val = uinit(k_wv, (n_heads, input_dim, val_dim))
    W_out = uinit(k_wo, (n_heads, key_dim, embed_dim))

    # Case 1: self-attention (h = q, i.e. forward with h=None).
    batch, n_query, graph_size = 2, 8, 8
    q = jax.random.normal(k_q, (batch, n_query, input_dim), jnp.float32)
    h = q
    ref = _reference(q, h, W_query, W_key, W_val, W_out)

    out_f32 = jax.block_until_ready(
        multi_head_attention(q, h, W_query, W_key, W_val, W_out,
                             mxu_dtype=jnp.float32))
    assert out_f32.shape == (batch, n_query, embed_dim)
    assert jnp.allclose(out_f32, ref, atol=1e-4, rtol=1e-4), "f32 mismatch"

    out_bf16 = jax.block_until_ready(
        multi_head_attention(q, h, W_query, W_key, W_val, W_out))
    assert jnp.allclose(out_bf16, ref, atol=5e-2, rtol=5e-2), "bf16 mismatch"

    # Case 2: cross-attention with graph_size not a sublane multiple
    # (exercises the wrapper padding + key-column masking path).
    graph_size2 = 10
    h2 = jax.random.normal(k_h, (batch, graph_size2, input_dim), jnp.float32)
    ref2 = _reference(q, h2, W_query, W_key, W_val, W_out)
    out2 = jax.block_until_ready(
        multi_head_attention(q, h2, W_query, W_key, W_val, W_out))
    assert out2.shape == (batch, n_query, embed_dim)
    assert jnp.allclose(out2, ref2, atol=5e-2, rtol=5e-2), "cross-attn mismatch"

    print("KERNEL_OK")
</pallas_src>

<mosaic_0001>
module attributes {stable_mosaic.version = 11 : i64} {
  func.func @_mha_kernel(%arg0: i32, %arg1: memref<2x8x32xf32, #tpu.memory_space<vmem>>, %arg2: memref<2x8x32xf32, #tpu.memory_space<vmem>>, %arg3: memref<32x32xf32, #tpu.memory_space<vmem>>, %arg4: memref<32x64xf32, #tpu.memory_space<vmem>>, %arg5: memref<32x32xf32, #tpu.memory_space<vmem>>, %arg6: memref<2x8x32xf32, #tpu.memory_space<vmem>>) attributes {dimension_semantics = [#tpu.dimension_semantics<parallel>], iteration_bounds = array<i64: 1>, scalar_prefetch = 0 : i64, scratch_operands = 0 : i64, tpu.core_type = #tpu.core_type<tc>, window_params = [{transform_indices = @transform_0, window_bounds = array<i64: 2, 8, 32>}, {transform_indices = @transform_1, window_bounds = array<i64: 2, 8, 32>}, {pipeline_mode = #tpu.pipeline_mode<synchronous>, transform_indices = @transform_2, window_bounds = array<i64: 32, 32>}, {pipeline_mode = #tpu.pipeline_mode<synchronous>, transform_indices = @transform_3, window_bounds = array<i64: 32, 64>}, {pipeline_mode = #tpu.pipeline_mode<synchronous>, transform_indices = @transform_4, window_bounds = array<i64: 32, 32>}, {transform_indices = @transform_5, window_bounds = array<i64: 2, 8, 32>}]} {
    %c0 = arith.constant 0 : index
    %c0_0 = arith.constant 0 : index
    %c0_1 = arith.constant 0 : index
    %0 = vector.load %arg1[%c0, %c0_0, %c0_1] : memref<2x8x32xf32, #tpu.memory_space<vmem>>, vector<2x8x32xf32>
    %1 = vector.shape_cast %0 : vector<2x8x32xf32> to vector<16x32xf32>
    %c0_2 = arith.constant 0 : index
    %c0_3 = arith.constant 0 : index
    %c0_4 = arith.constant 0 : index
    %2 = vector.load %arg2[%c0_2, %c0_3, %c0_4] : memref<2x8x32xf32, #tpu.memory_space<vmem>>, vector<2x8x32xf32>
    %3 = vector.shape_cast %2 : vector<2x8x32xf32> to vector<16x32xf32>
    %c0_5 = arith.constant 0 : index
    %c0_6 = arith.constant 0 : index
    %4 = vector.load %arg3[%c0_5, %c0_6] : memref<32x32xf32, #tpu.memory_space<vmem>>, vector<32x32xf32>
    %cst = arith.constant dense<0.000000e+00> : vector<16x32xf32>
    %5 = tpu.matmul %1, %4, %cst {dimension_numbers = #tpu.dot_dimension_numbers<[1], [0], [0], [1], [0, 0, 1, 1], [], []>} : vector<16x32xf32>, vector<32x32xf32>, vector<16x32xf32> -> vector<16x32xf32>
    %cst_7 = arith.constant 0.353553385 : f32
    %6 = vector.broadcast %cst_7 : f32 to vector<16x32xf32>
    %7 = arith.mulf %5, %6 : vector<16x32xf32>
    %c0_8 = arith.constant 0 : index
    %c0_9 = arith.constant 0 : index
    %8 = vector.load %arg4[%c0_8, %c0_9] : memref<32x64xf32, #tpu.memory_space<vmem>>, vector<32x64xf32>
    %cst_10 = arith.constant dense<0.000000e+00> : vector<16x64xf32>
    %9 = tpu.matmul %3, %8, %cst_10 {dimension_numbers = #tpu.dot_dimension_numbers<[1], [0], [0], [1], [0, 0, 1, 1], [], []>} : vector<16x32xf32>, vector<32x64xf32>, vector<16x64xf32> -> vector<16x64xf32>
    %10 = vector.shape_cast %7 : vector<16x32xf32> to vector<2x8x32xf32>
    %11 = vector.extract_strided_slice %9 {offsets = [0, 0], sizes = [16, 32], strides = [1, 1]} : vector<16x64xf32> to vector<16x32xf32>
    %12 = vector.shape_cast %11 : vector<16x32xf32> to vector<2x8x32xf32>
    %13 = vector.extract_strided_slice %9 {offsets = [0, 32], sizes = [16, 32], strides = [1, 1]} : vector<16x64xf32> to vector<16x32xf32>
    %14 = vector.shape_cast %13 : vector<16x32xf32> to vector<2x8x32xf32>
    %15 = vector.extract_strided_slice %10 {offsets = [0, 0, 0], sizes = [2, 8, 8], strides = [1, 1, 1]} : vector<2x8x32xf32> to vector<2x8x8xf32>
    %16 = vector.extract_strided_slice %12 {offsets = [0, 0, 0], sizes = [2, 8, 8], strides = [1, 1, 1]} : vector<2x8x32xf32> to vector<2x8x8xf32>
    %17 = vector.extract_strided_slice %14 {offsets = [0, 0, 0], sizes = [2, 8, 8], strides = [1, 1, 1]} : vector<2x8x32xf32> to vector<2x8x8xf32>
    %cst_11 = arith.constant dense<0.000000e+00> : vector<2x8x8xf32>
    %18 = tpu.matmul %15, %16, %cst_11 {dimension_numbers = #tpu.dot_dimension_numbers<[2], [2], [1], [1], [0, 0, 0, 1, 1, 1], [0], [0]>} : vector<2x8x8xf32>, vector<2x8x8xf32>, vector<2x8x8xf32> -> vector<2x8x8xf32>
    %cst_12 = arith.constant dense<0xFF800000> : vector<2x8xf32>
    %19 = vector.multi_reduction <maximumf>, %18, %cst_12 [2] : vector<2x8x8xf32> to vector<2x8xf32>
    %20 = vector.shape_cast %19 : vector<2x8xf32> to vector<2x8x1xf32>
    %21 = vector.broadcast %20 : vector<2x8x1xf32> to vector<2x8x8xf32>
    %22 = arith.subf %18, %21 : vector<2x8x8xf32>
    %23 = math.exp %22 : vector<2x8x8xf32>
    %cst_13 = arith.constant dense<0.000000e+00> : vector<2x8xf32>
    %24 = vector.multi_reduction <add>, %23, %cst_13 [2] : vector<2x8x8xf32> to vector<2x8xf32>
    %25 = vector.shape_cast %24 : vector<2x8xf32> to vector<2x8x1xf32>
    %26 = vector.broadcast %25 : vector<2x8x1xf32> to vector<2x8x8xf32>
    %27 = arith.divf %23, %26 : vector<2x8x8xf32>
    %cst_14 = arith.constant dense<0.000000e+00> : vector<2x8x8xf32>
    %28 = tpu.matmul %27, %17, %cst_14 {dimension_numbers = #tpu.dot_dimension_numbers<[2], [1], [1], [2], [0, 0, 0, 1, 1, 2], [0], [0]>} : vector<2x8x8xf32>, vector<2x8x8xf32>, vector<2x8x8xf32> -> vector<2x8x8xf32>
    %29 = vector.extract_strided_slice %10 {offsets = [0, 0, 8], sizes = [2, 8, 8], strides = [1, 1, 1]} : vector<2x8x32xf32> to vector<2x8x8xf32>
    %30 = vector.extract_strided_slice %12 {offsets = [0, 0, 8], sizes = [2, 8, 8], strides = [1, 1, 1]} : vector<2x8x32xf32> to vector<2x8x8xf32>
    %31 = vector.extract_strided_slice %14 {offsets = [0, 0, 8], sizes = [2, 8, 8], strides = [1, 1, 1]} : vector<2x8x32xf32> to vector<2x8x8xf32>
    %cst_15 = arith.constant dense<0.000000e+00> : vector<2x8x8xf32>
    %32 = tpu.matmul %29, %30, %cst_15 {dimension_numbers = #tpu.dot_dimension_numbers<[2], [2], [1], [1], [0, 0, 0, 1, 1, 1], [0], [0]>} : vector<2x8x8xf32>, vector<2x8x8xf32>, vector<2x8x8xf32> -> vector<2x8x8xf32>
    %cst_16 = arith.constant dense<0xFF800000> : vector<2x8xf32>
    %33 = vector.multi_reduction <maximumf>, %32, %cst_16 [2] : vector<2x8x8xf32> to vector<2x8xf32>
    %34 = vector.shape_cast %33 : vector<2x8xf32> to vector<2x8x1xf32>
    %35 = vector.broadcast %34 : vector<2x8x1xf32> to vector<2x8x8xf32>
    %36 = arith.subf %32, %35 : vector<2x8x8xf32>
    %37 = math.exp %36 : vector<2x8x8xf32>
    %cst_17 = arith.constant dense<0.000000e+00> : vector<2x8xf32>
    %38 = vector.multi_reduction <add>, %37, %cst_17 [2] : vector<2x8x8xf32> to vector<2x8xf32>
    %39 = vector.shape_cast %38 : vector<2x8xf32> to vector<2x8x1xf32>
    %40 = vector.broadcast %39 : vector<2x8x1xf32> to vector<2x8x8xf32>
    %41 = arith.divf %37, %40 : vector<2x8x8xf32>
    %cst_18 = arith.constant dense<0.000000e+00> : vector<2x8x8xf32>
    %42 = tpu.matmul %41, %31, %cst_18 {dimension_numbers = #tpu.dot_dimension_numbers<[2], [1], [1], [2], [0, 0, 0, 1, 1, 2], [0], [0]>} : vector<2x8x8xf32>, vector<2x8x8xf32>, vector<2x8x8xf32> -> vector<2x8x8xf32>
    %43 = vector.extract_strided_slice %10 {offsets = [0, 0, 16], sizes = [2, 8, 8], strides = [1, 1, 1]} : vector<2x8x32xf32> to vector<2x8x8xf32>
    %44 = vector.extract_strided_slice %12 {offsets = [0, 0, 16], sizes = [2, 8, 8], strides = [1, 1, 1]} : vector<2x8x32xf32> to vector<2x8x8xf32>
    %45 = vector.extract_strided_slice %14 {offsets = [0, 0, 16], sizes = [2, 8, 8], strides = [1, 1, 1]} : vector<2x8x32xf32> to vector<2x8x8xf32>
    %cst_19 = arith.constant dense<0.000000e+00> : vector<2x8x8xf32>
    %46 = tpu.matmul %43, %44, %cst_19 {dimension_numbers = #tpu.dot_dimension_numbers<[2], [2], [1], [1], [0, 0, 0, 1, 1, 1], [0], [0]>} : vector<2x8x8xf32>, vector<2x8x8xf32>, vector<2x8x8xf32> -> vector<2x8x8xf32>
    %cst_20 = arith.constant dense<0xFF800000> : vector<2x8xf32>
    %47 = vector.multi_reduction <maximumf>, %46, %cst_20 [2] : vector<2x8x8xf32> to vector<2x8xf32>
    %48 = vector.shape_cast %47 : vector<2x8xf32> to vector<2x8x1xf32>
    %49 = vector.broadcast %48 : vector<2x8x1xf32> to vector<2x8x8xf32>
    %50 = arith.subf %46, %49 : vector<2x8x8xf32>
    %51 = math.exp %50 : vector<2x8x8xf32>
    %cst_21 = arith.constant dense<0.000000e+00> : vector<2x8xf32>
    %52 = vector.multi_reduction <add>, %51, %cst_21 [2] : vector<2x8x8xf32> to vector<2x8xf32>
    %53 = vector.shape_cast %52 : vector<2x8xf32> to vector<2x8x1xf32>
    %54 = vector.broadcast %53 : vector<2x8x1xf32> to vector<2x8x8xf32>
    %55 = arith.divf %51, %54 : vector<2x8x8xf32>
    %cst_22 = arith.constant dense<0.000000e+00> : vector<2x8x8xf32>
    %56 = tpu.matmul %55, %45, %cst_22 {dimension_numbers = #tpu.dot_dimension_numbers<[2], [1], [1], [2], [0, 0, 0, 1, 1, 2], [0], [0]>} : vector<2x8x8xf32>, vector<2x8x8xf32>, vector<2x8x8xf32> -> vector<2x8x8xf32>
    %57 = vector.extract_strided_slice %10 {offsets = [0, 0, 24], sizes = [2, 8, 8], strides = [1, 1, 1]} : vector<2x8x32xf32> to vector<2x8x8xf32>
    %58 = vector.extract_strided_slice %12 {offsets = [0, 0, 24], sizes = [2, 8, 8], strides = [1, 1, 1]} : vector<2x8x32xf32> to vector<2x8x8xf32>
    %59 = vector.extract_strided_slice %14 {offsets = [0, 0, 24], sizes = [2, 8, 8], strides = [1, 1, 1]} : vector<2x8x32xf32> to vector<2x8x8xf32>
    %cst_23 = arith.constant dense<0.000000e+00> : vector<2x8x8xf32>
    %60 = tpu.matmul %57, %58, %cst_23 {dimension_numbers = #tpu.dot_dimension_numbers<[2], [2], [1], [1], [0, 0, 0, 1, 1, 1], [0], [0]>} : vector<2x8x8xf32>, vector<2x8x8xf32>, vector<2x8x8xf32> -> vector<2x8x8xf32>
    %cst_24 = arith.constant dense<0xFF800000> : vector<2x8xf32>
    %61 = vector.multi_reduction <maximumf>, %60, %cst_24 [2] : vector<2x8x8xf32> to vector<2x8xf32>
    %62 = vector.shape_cast %61 : vector<2x8xf32> to vector<2x8x1xf32>
    %63 = vector.broadcast %62 : vector<2x8x1xf32> to vector<2x8x8xf32>
    %64 = arith.subf %60, %63 : vector<2x8x8xf32>
    %65 = math.exp %64 : vector<2x8x8xf32>
    %cst_25 = arith.constant dense<0.000000e+00> : vector<2x8xf32>
    %66 = vector.multi_reduction <add>, %65, %cst_25 [2] : vector<2x8x8xf32> to vector<2x8xf32>
    %67 = vector.shape_cast %66 : vector<2x8xf32> to vector<2x8x1xf32>
    %68 = vector.broadcast %67 : vector<2x8x1xf32> to vector<2x8x8xf32>
    %69 = arith.divf %65, %68 : vector<2x8x8xf32>
    %cst_26 = arith.constant dense<0.000000e+00> : vector<2x8x8xf32>
    %70 = tpu.matmul %69, %59, %cst_26 {dimension_numbers = #tpu.dot_dimension_numbers<[2], [1], [1], [2], [0, 0, 0, 1, 1, 2], [0], [0]>} : vector<2x8x8xf32>, vector<2x8x8xf32>, vector<2x8x8xf32> -> vector<2x8x8xf32>
    %71 = tpu.concatenate %28, %42, %56, %70 in 2 : vector<2x8x8xf32>, vector<2x8x8xf32>, vector<2x8x8xf32>, vector<2x8x8xf32> -> vector<2x8x32xf32>
    %72 = vector.shape_cast %71 : vector<2x8x32xf32> to vector<16x32xf32>
    %c0_27 = arith.constant 0 : index
    %c0_28 = arith.constant 0 : index
    %73 = vector.load %arg5[%c0_27, %c0_28] : memref<32x32xf32, #tpu.memory_space<vmem>>, vector<32x32xf32>
    %cst_29 = arith.constant dense<0.000000e+00> : vector<16x32xf32>
    %74 = tpu.matmul %72, %73, %cst_29 {dimension_numbers = #tpu.dot_dimension_numbers<[1], [0], [0], [1], [0, 0, 1, 1], [], []>} : vector<16x32xf32>, vector<32x32xf32>, vector<16x32xf32> -> vector<16x32xf32>
    %75 = vector.shape_cast %74 : vector<16x32xf32> to vector<2x8x32xf32>
    %c0_30 = arith.constant 0 : index
    %c0_31 = arith.constant 0 : index
    %c0_32 = arith.constant 0 : index
    %76 = vector.load %arg6[%c0_30, %c0_31, %c0_32] : memref<2x8x32xf32, #tpu.memory_space<vmem>>, vector<2x8x32xf32>
    tpu.vector_store %arg6[%c0_30, %c0_31, %c0_32], %75 {strides = array<i32>} : memref<2x8x32xf32, #tpu.memory_space<vmem>>, vector<2x8x32xf32>,
    return
  }
  func.func @transform_0(%arg0: i32) -> (i32, i32, i32) {
    %c0_i32 = arith.constant 0 : i32
    %c0_i32_0 = arith.constant 0 : i32
    %c0_i32_1 = arith.constant 0 : i32
    return %arg0, %c0_i32, %c0_i32_0 : i32, i32, i32
  }
  func.func @transform_1(%arg0: i32) -> (i32, i32, i32) {
    %c0_i32 = arith.constant 0 : i32
    %c0_i32_0 = arith.constant 0 : i32
    %c0_i32_1 = arith.constant 0 : i32
    return %arg0, %c0_i32, %c0_i32_0 : i32, i32, i32
  }
  func.func @transform_2(%arg0: i32) -> (i32, i32) {
    %c0_i32 = arith.constant 0 : i32
    %c0_i32_0 = arith.constant 0 : i32
    %c0_i32_1 = arith.constant 0 : i32
    return %c0_i32, %c0_i32_0 : i32, i32
  }
  func.func @transform_3(%arg0: i32) -> (i32, i32) {
    %c0_i32 = arith.constant 0 : i32
    %c0_i32_0 = arith.constant 0 : i32
    %c0_i32_1 = arith.constant 0 : i32
    return %c0_i32, %c0_i32_0 : i32, i32
  }
  func.func @transform_4(%arg0: i32) -> (i32, i32) {
    %c0_i32 = arith.constant 0 : i32
    %c0_i32_0 = arith.constant 0 : i32
    %c0_i32_1 = arith.constant 0 : i32
    return %c0_i32, %c0_i32_0 : i32, i32
  }
  func.func @transform_5(%arg0: i32) -> (i32, i32, i32) {
    %c0_i32 = arith.constant 0 : i32
    %c0_i32_0 = arith.constant 0 : i32
    %c0_i32_1 = arith.constant 0 : i32
    return %arg0, %c0_i32, %c0_i32_0 : i32, i32, i32
  }
}

</mosaic_0001>

<bundles_post_ra>
// kernel: tpu_custom_call.1
= control target key start
LH: loop header
LB: loop body
LE: loop exit
PB: predicated region body
PF: predicated region fallthrough
CT: control target
= control target key end

     0   :  { %10 = vsyncpa [#allocation3], 0  ;;  %s2326_s0 = inlined_call_operand.hbm [shape: f32[2,8,32], index: 0, kind: input, shape index: {}]   ;;  %s2327_s1 = inlined_call_operand.hbm [shape: f32[2,8,32], index: 1, kind: input, shape index: {}]   ;;  %s2328_s2 = inlined_call_operand.hbm [shape: f32[32,32], index: 2, kind: input, shape index: {}]   ;;  %s2329_s3 = inlined_call_operand.hbm [shape: f32[32,64], index: 3, kind: input, shape index: {}]   ;;  %s2330_s4 = inlined_call_operand.hbm [shape: f32[32,32], index: 4, kind: input, shape index: {}]   ;;  %s2331_s5 = inlined_call_operand.hbm [shape: f32[2,8,32], index: 5, kind: output, shape index: {}]  }
   0x1   :  { %11 = vsyncpa [#allocation6], 0 }
   0x2   :  { %12 = vsyncpa [#allocation9], 0 }
   0x3   :  { %13 = vsyncpa [#allocation4], 0  ;;  %s2093_s18 = smov [#allocation5]   ;;  %s2094_s20 = smov [#allocation8]  }
   0x4   :  { %s31_s19 = sshll.u32 %s2093_s18, 4  ;;  %s55_s21 = sshll.u32 %s2094_s20, 4  ;;  %s32_s19 = int_to_ptr.vmem [resolvable:$true] %s31_s19  ;;  %s56_s21 = int_to_ptr.vmem [resolvable:$true] %s55_s21 }
   0x5   :  { %s1973_s22 = scalar_lea.vmem %s32_s19, 256  ;;  %p1978_p1 = scmp.lt.s32.totalorder %s32_s19, %s32_s19 }
   0x6   :  { %p1974_p0 = scmp.ne.s32.totalorder %s32_s19, %s1973_s22  ;;  %p1979_p2 = scmp.lt.s32.totalorder %s1973_s22, %s1973_s22 }
   0x8   :  { %p1980_p3 = por %p1979_p2, %p1978_p1 }
   0xa   :  { %p1981_p4 = pnand %p1980_p3, %p1974_p0 }
   0xc   :  { %1984 = shalt.err (!%p1981_p4)
}
   0xd   :  { %s2095_s23 = smov 128   ;;  %s2096_s24 = smov 8  }
   0xe   :  { %37 = dma.hbm_to_vmem [thread:$0]  %s2327_s1, 256, %s32_s19, [#allocation6], %s2095_s23, %s2095_s23, %s2096_s24  }
   0xf   :  { %s1993_s27 = scalar_lea.vmem %s56_s21, 512  ;;  %p1998_p6 = scmp.lt.s32.totalorder %s56_s21, %s56_s21 }
  0x10   :  { %p1994_p5 = scmp.ne.s32.totalorder %s56_s21, %s1993_s27  ;;  %p1999_p7 = scmp.lt.s32.totalorder %s1993_s27, %s1993_s27 }
  0x12   :  { %p2000_p8 = por %p1999_p7, %p1998_p6 }
  0x14   :  { %p2001_p9 = pnand %p2000_p8, %p1994_p5 }
  0x16   :  { %2004 = shalt.err (!%p2001_p9)
}
  0x17   :  { %61 = dma.hbm_to_vmem [thread:$0]  %s2329_s3, 512, %s56_s21, [#allocation9], %s2095_s23, %s2095_s23, %s2096_s24  }
  0x18   :  { %s2097_s30 = smov [#allocation2]   ;;  %s2098_s7 = smov [#allocation7]  }
  0x19   :  { %s19_s6 = sshll.u32 %s2097_s30, 4  ;;  %s43_s8 = sshll.u32 %s2098_s7, 4  ;;  %s20_s6 = int_to_ptr.vmem [resolvable:$true] %s19_s6  ;;  %s44_s8 = int_to_ptr.vmem [resolvable:$true] %s43_s8 }
  0x1a   :  { %s2013_s1 = scalar_lea.vmem %s20_s6, 256  ;;  %p2018_p11 = scmp.lt.s32.totalorder %s20_s6, %s20_s6 }
  0x1b   :  { %p2014_p10 = scmp.ne.s32.totalorder %s20_s6, %s2013_s1  ;;  %p2019_p12 = scmp.lt.s32.totalorder %s2013_s1, %s2013_s1 }
  0x1d   :  { %p2020_p13 = por %p2019_p12, %p2018_p11 }
  0x1f   :  { %p2021_p0 = pnand %p2020_p13, %p2014_p10 }
  0x21   :  { %2024 = shalt.err (!%p2021_p0)
}
  0x22   :  { %25 = dma.hbm_to_vmem [thread:$0]  %s2326_s0, 256, %s20_s6, [#allocation3], %s2095_s23, %s2095_s23, %s2096_s24  }
  0x23   :  { %s2033_s3 = scalar_lea.vmem %s44_s8, 512  ;;  %p2038_p2 = scmp.lt.s32.totalorder %s44_s8, %s44_s8 }
  0x24   :  { %p2034_p1 = scmp.ne.s32.totalorder %s44_s8, %s2033_s3  ;;  %p2039_p3 = scmp.lt.s32.totalorder %s2033_s3, %s2033_s3 }
  0x26   :  { %p2040_p4 = por %p2039_p3, %p2038_p2 }
  0x28   :  { %p2041_p5 = pnand %p2040_p4, %p2034_p1 }
  0x2a   :  { %2044 = shalt.err (!%p2041_p5)
}
  0x2b   :  { %49 = dma.hbm_to_vmem [thread:$0]  %s2328_s2, 512, %s44_s8, [#allocation6], %s2095_s23, %s2095_s23, %s2096_s24  }
  0x2c   :  { %s2099_s13 = smov [#allocation10]  }
  0x2d   :  { %s67_s14 = sshll.u32 %s2099_s13, 4  ;;  %s68_s14 = int_to_ptr.vmem [resolvable:$true] %s67_s14 }
  0x2e   :  { %s2053_s15 = scalar_lea.vmem %s68_s14, 512  ;;  %p2058_p7 = scmp.lt.s32.totalorder %s68_s14, %s68_s14 }
  0x2f   :  { %p2054_p6 = scmp.ne.s32.totalorder %s68_s14, %s2053_s15  ;;  %p2059_p8 = scmp.lt.s32.totalorder %s2053_s15, %s2053_s15 }
  0x31   :  { %p2060_p9 = por %p2059_p8, %p2058_p7 }
  0x33   :  { %p2061_p10 = pnand %p2060_p9, %p2054_p6 }
  0x35   :  { %2064 = shalt.err (!%p2061_p10)
}
  0x36   :  { %73 = dma.hbm_to_vmem [thread:$0]  %s2330_s4, 512, %s68_s14, [#allocation9], %s2095_s23, %s2095_s23, %s2096_s24  }
  0x37   :  { %2085 = dma.done.wait [#allocation3], 256  }
  0x38   :  { %2086 = vsyncadd [#allocation3], 4294967040 }
  0x39   :  { %2087 = dma.done.wait [#allocation6], 768  }
  0x3a   :  { %2088 = vsyncadd [#allocation6], 4294966528 }
  0x3b   :  { %2089 = dma.done.wait [#allocation9], 1024  }
  0x3c   :  { %2090 = vsyncadd [#allocation9], 4294966272  ;;  %v96_v0 = vld [vmem:[#allocation7 + $0x18] sm:$0xff]  ;;  %v95_v2 = vld [vmem:[#allocation7 + $0x10] sm:$0xff]  ;;  %vm97_vm0 = vcmask 261120   ;;  %v2100_v12 = vmov 0.0  }
  0x3d   :  { %v184_v1 = vld [vmem:[#allocation8 + $0x18] sm:$0xff]  ;;  %1801 = vmatprep.subr.mxu0 %v96_v0  ;;  %v183_v3 = vld [vmem:[#allocation8 + $0x10] sm:$0xff]  ;;  %v94_v4 = vld [vmem:[#allocation7 + $0x8] sm:$0xff]  ;;  %vm2101_vm1 = vmmov 0   ;;  %vm266_vm2 = vcmask 64512   ;;  %s2102_s2 = smov 96  }
  0x3e   :  { %1812 = vmatprep.subr.mxu1 %v184_v1  ;;  %1802 = vmatpush3.msra.mxu0 %v96_v0  ;;  %v182_v5 = vld [vmem:[#allocation8 + $0x8] sm:$0xff]  ;;  %v93_v6 = vld [vmem:[#allocation7] sm:$0xff]  ;;  %v91_v9 = vld [vmem:[#allocation5] sm:$0xff]  ;;  %s2103_s4 = smov 120   ;;  %s2104_s17 = smov 88   ;;  %vm1612_vm3 = vcmask 195584  }
  0x3f   :  { %1813 = vmatpush3.msra.mxu1 %v184_v1  ;;  %1803 = vmatprep.subr.mxu0 %v95_v2  ;;  %v181_v7 = vld [vmem:[#allocation8] sm:$0xff]  ;;  %v90_v10 = vld [vmem:[#allocation2 + $0x8] sm:$0xff]  ;;  %v92_v11 = vld [vmem:[#allocation5 + $0x8] sm:$0xff]  ;;  %s2105_s18 = smov 112   ;;  %s2106_s19 = smov 80   ;;  %vm1609_vm4 = vcmask 130048  }
  0x40   :  { %1814 = vmatprep.subr.mxu1 %v183_v3  ;;  %1804 = vmatpush3.msra.mxu0 %v95_v2  ;;  %v89_v8 = vld [vmem:[#allocation2] sm:$0xff]  ;;  %s2107_s20 = smov 104   ;;  %s2108_s21 = smov 72  }
  0x41   :  { %1815 = vmatpush3.msra.mxu1 %v183_v3  ;;  %1805 = vmatprep.subr.mxu0 %v94_v4  ;;  %s2109_s22 = smov 16   ;;  %s2110_s25 = smov 24  }
  0x42   :  { %1816 = vmatprep.subr.mxu1 %v182_v5  ;;  %1806 = vmatpush3.msra.mxu0 %v94_v4  ;;  %s2111_s26 = smov [#allocation11]  }
  0x43   :  { %1817 = vmatpush3.msra.mxu1 %v182_v5  ;;  %1807 = vmatprep.subr.mxu0 %v93_v6  ;;  %s1707_s27 = sshll.u32 %s2111_s26, 4  ;;  %s1708_s27 = int_to_ptr.vmem [resolvable:$true] %s1707_s27 }
  0x44   :  { %1818 = vmatprep.subr.mxu1 %v181_v7  ;;  %1808 = vmatpush3.msra.mxu0 %v93_v6  ;;  %s2065_s28 = scalar_lea.vmem %s1708_s27, 256  ;;  %p2070_p12 = scmp.lt.s32.totalorder %s1708_s27, %s1708_s27 }
  0x45   :  { %1809 = vmatprep.mubr.msk.f32.mxu0 %vm97_vm0, %v89_v8  ;;  %1819 = vmatpush3.msra.mxu1 %v181_v7  ;;  %p2066_p11 = scmp.ne.s32.totalorder %s1708_s27, %s2065_s28  ;;  %p2071_p13 = scmp.lt.s32.totalorder %s2065_s28, %s2065_s28 }
  0x46   :  { %1820 = vmatprep.mubr.msk.f32.mxu1 %vm97_vm0, %v91_v9  ;;  %1810 = vmatmul.mubr.msk.f32.vlgmr.msra.gmra.mxu0 %vm97_vm0, %v90_v10 }
  0x47   :  { %1821 = vmatmul.mubr.msk.f32.vlgmr.msra.gmra.mxu1 %vm97_vm0, %v92_v11  ;;  %1823 = vmatprep.subr.mxu1 %v2100_v12  ;;  %p2072_p0 = por %p2071_p13, %p2070_p12 }
  0x48   :  { %1833 = vmatprep.subr.mxu0 %v2100_v12  ;;  %1825 = vmatprep.mubr.msk.f32.mxu1 %vm2101_vm1, %v2100_v12 }
  0x49   :  { %1835 = vmatprep.mubr.msk.f32.mxu0 %vm2101_vm1, %v2100_v12  ;;  %p2073_p1 = pnand %p2072_p0, %p2066_p11 }
 0x106   :  { %v1811_v13 = vpop.f32.mrf.mxu0 }
 0x107   :  { %v2182_v14 = vpop.f32.mrf.mxu1  ;;  %v2200_v18 = vmul.f32 0.35355338, %v1811_v13 }
 0x108   :  { %517 = vrot.lane.b32.xlu1 %v2182_v14, %s2102_s2  ;;  %v170_v15 = vpop.f32.mrf.mxu0 }
 0x109   :  { %v2185_v16 = vpop.f32.mrf.mxu1  ;;  %v2187_v17 = vmul.f32 0.35355338, %v170_v15 }
 0x10a   :  { %1824 = vmatpush3.xpose.msk.msra.mxu1 %vm266_vm2, %v2185_v16 }
 0x10b   :  { %1828 = vmatprep.subr.mxu1 %v2100_v12 }
 0x10c   :  { %595 = vrot.lane.b32.xlu1 %v2185_v16, %s2103_s4 }
 0x10d   :  { %1826 = vmatmul.mubr.msk.f32.vlgmr.msra.gmra.mxu1 %vm266_vm2, %v2187_v17 }
 0x10e   :  { %1829 = vmatpush3.xpose.msk.msra.mxu1 %vm266_vm2, %v2182_v14  ;;  %1830 = vmatprep.mubr.msk.f32.mxu1 %vm2101_vm1, %v2100_v12 }
 0x10f   :  { %1838 = vmatprep.subr.mxu1 %v2100_v12 }
 0x110   :  { %673 = vrot.lane.b32.xlu1 %v2182_v14, %s2103_s4 }
 0x111   :  { %1831 = vmatmul.mubr.msk.f32.vlgmr.msra.gmra.mxu1 %vm266_vm2, %v2200_v18 }
 0x112   :  { %1840 = vmatprep.mubr.msk.f32.mxu1 %vm2101_vm1, %v2100_v12 }
 0x17a   :  { %v518_v19 = vpop.permute.xlu1 %517 }
 0x17b   :  { %1839 = vmatpush3.msra.mxu1 %v518_v19 }
 0x17c   :  { %1848 = vmatprep.subr.mxu1 %v2100_v12 }
 0x17e   :  { %v596_v37 = vpop.permute.xlu1 %595 }
 0x182   :  { %v674_v38 = vpop.permute.xlu1 %673 }
 0x1cd   :  { %v339_v20 = vpop.f32.mrf.mxu1 }
 0x1ce   :  { %v419_v21 = vsel %vm266_vm2, %v339_v20, -inf }
 0x1cf   :  { %420 = vmax.xlane.f32.xlu0 %v419_v21  ;;  %v1827_v22 = vpop.f32.mrf.mxu1 }
 0x1d1   :  { %v415_v23 = vpop.f32.mrf.mxu1 }
 0x1d2   :  { %v422_v24 = vsel %vm266_vm2, %v415_v23, -inf }
 0x1d3   :  { %423 = vmax.xlane.f32.xlu0 %v422_v24  ;;  %v1832_v25 = vpop.f32.mrf.mxu1 }
 0x1e9   :  { %441 = vrot.lane.b32.xlu0 %v2185_v16, %s2102_s2 }
 0x1ed   :  { %593 = vrot.lane.b32.xlu0 %v2187_v17, %s2103_s4 }
 0x258   :  { %v421_v26 = vpop.xlane.xlu0 %420 }
 0x259   :  { %v425_v27 = vsub.f32 %v339_v20, %v421_v26 }
 0x25b   :  { %v427_v28 = vmul.f32 1.442695, %v425_v27 }
 0x25c   :  { %v424_v29 = vpop.xlane.xlu0 %423 }
 0x25d   :  { %1933 = vpow2.f32 %v427_v28  ;;  %v426_v30 = vsub.f32 %v415_v23, %v424_v29 }
 0x25f   :  { %v429_v31 = vmul.f32 1.442695, %v426_v30 }
 0x260   :  { %v442_v32 = vpop.permute.xlu0 %441 }
 0x261   :  { %1935 = vpow2.f32 %v429_v31  ;;  %1834 = vmatpush3.msra.mxu0 %v442_v32 }
 0x262   :  { %1843 = vmatprep.subr.mxu0 %v2100_v12 }
 0x264   :  { %v594_v45 = vpop.permute.xlu0 %593 }
 0x26a   :  { %v1934_v33 = vpop.eup %1933 }
 0x26b   :  { %v431_v34 = vsel %vm266_vm2, %v1934_v33, 0.0 }
 0x26c   :  { %432 = vadd.xlane.f32.xlu1 %v431_v34 }
 0x26e   :  { %v1936_v35 = vpop.eup %1935 }
 0x26f   :  { %v434_v36 = vsel %vm266_vm2, %v1936_v35, 0.0 }
 0x270   :  { %435 = vadd.xlane.f32.xlu1 %v434_v36 }
 0x281   :  { %671 = vrot.lane.b32.xlu1 %v2200_v18, %s2103_s4 }
 0x2f5   :  { %v433_v39 = vpop.xlane.xlu1 %432 }
 0x2f6   :  { %1937 = vrcp.f32 %v433_v39 }
 0x2f9   :  { %v436_v40 = vpop.xlane.xlu1 %435 }
 0x2fa   :  { %1939 = vrcp.f32 %v436_v40 }
 0x2fd   :  { %v672_v46 = vpop.permute.xlu1 %671 }
 0x303   :  { %v1938_v41 = vpop.eup %1937 }
 0x304   :  { %v438_v42 = vmul.f32 %v1938_v41, %v1934_v33 }
 0x306   :  { %1836 = vmatmul.mubr.msk.f32.vlgmr.msra.gmra.mxu0 %vm266_vm2, %v438_v42 }
 0x307   :  { %v1940_v43 = vpop.eup %1939  ;;  %1844 = vmatpush3.xpose.msk.msra.mxu0 %vm266_vm2, %v596_v37  ;;  %1845 = vmatprep.mubr.msk.f32.mxu0 %vm2101_vm1, %v2100_v12 }
 0x308   :  { %v440_v44 = vmul.f32 %v1940_v43, %v1936_v35  ;;  %1853 = vmatprep.subr.mxu0 %v2100_v12 }
 0x30a   :  { %1841 = vmatmul.mubr.msk.f32.vlgmr.msra.gmra.mxu1 %vm266_vm2, %v440_v44  ;;  %1846 = vmatmul.mubr.msk.f32.vlgmr.msra.gmra.mxu0 %vm266_vm2, %v594_v45 }
 0x30b   :  { %1849 = vmatpush3.xpose.msk.msra.mxu1 %vm266_vm2, %v674_v38  ;;  %1850 = vmatprep.mubr.msk.f32.mxu1 %vm2101_vm1, %v2100_v12 }
 0x30c   :  { %1858 = vmatprep.subr.mxu1 %v2100_v12  ;;  %1855 = vmatprep.mubr.msk.f32.mxu0 %vm2101_vm1, %v2100_v12 }
 0x30e   :  { %1851 = vmatmul.mubr.msk.f32.vlgmr.msra.gmra.mxu1 %vm266_vm2, %v672_v46 }
 0x30f   :  { %1860 = vmatprep.mubr.msk.f32.mxu1 %vm2101_vm1, %v2100_v12 }
 0x3c6   :  { %v2236_v47 = vpop.f32.mrf.mxu0 }
 0x3c8   :  { %v1837_v48 = vpop.f32.mrf.mxu0 }
 0x3ca   :  { %v2238_v49 = vpop.f32.mrf.mxu1  ;;  %v667_v50 = vpop.f32.mrf.mxu0 }
 0x3cb   :  { %v749_v51 = vsel %vm266_vm2, %v667_v50, -inf }
 0x3cc   :  { %750 = vmax.xlane.f32.xlu0 %v749_v51  ;;  %v1842_v52 = vpop.f32.mrf.mxu1  ;;  %v1847_v53 = vpop.f32.mrf.mxu0 }
 0x3ce   :  { %v745_v54 = vpop.f32.mrf.mxu1 }
 0x3cf   :  { %v752_v55 = vsel %vm266_vm2, %v745_v54, -inf }
 0x3d0   :  { %753 = vmax.xlane.f32.xlu1 %v752_v55  ;;  %v1852_v56 = vpop.f32.mrf.mxu1 }
 0x3e1   :  { %847 = vrot.lane.b32.xlu1 %v2182_v14, %s2104_s17 }
 0x3e2   :  { %771 = vrot.lane.b32.xlu0 %v2185_v16, %s2104_s17 }
 0x3e5   :  { %925 = vrot.lane.b32.xlu1 %v2185_v16, %s2105_s18 }
 0x3e9   :  { %1003 = vrot.lane.b32.xlu1 %v2182_v14, %s2105_s18 }
 0x3ed   :  { %1001 = vrot.lane.b32.xlu1 %v2200_v18, %s2105_s18 }
 0x455   :  { %v751_v57 = vpop.xlane.xlu0 %750 }
 0x456   :  { %v755_v58 = vsub.f32 %v667_v50, %v751_v57 }
 0x458   :  { %v757_v59 = vmul.f32 1.442695, %v755_v58 }
 0x459   :  { %v772_v60 = vpop.permute.xlu0 %771  ;;  %v754_v61 = vpop.xlane.xlu1 %753 }
 0x45a   :  { %1941 = vpow2.f32 %v757_v59  ;;  %v756_v62 = vsub.f32 %v745_v54, %v754_v61  ;;  %1854 = vmatpush3.msra.mxu0 %v772_v60 }
 0x45b   :  { %1863 = vmatprep.subr.mxu0 %v2100_v12 }
 0x45c   :  { %v759_v63 = vmul.f32 1.442695, %v756_v62 }
 0x45d   :  { %v848_v0 = vpop.permute.xlu1 %847 }
 0x45e   :  { %1943 = vpow2.f32 %v759_v63  ;;  %1859 = vmatpush3.msra.mxu1 %v848_v0 }
 0x45f   :  { %1868 = vmatprep.subr.mxu1 %v2100_v12 }
 0x461   :  { %v926_v7 = vpop.permute.xlu1 %925 }
 0x465   :  { %v1004_v11 = vpop.permute.xlu1 %1003 }
 0x467   :  { %v1942_v1 = vpop.eup %1941 }
 0x468   :  { %v761_v2 = vsel %vm266_vm2, %v1942_v1, 0.0 }
 0x469   :  { %762 = vadd.xlane.f32.xlu0 %v761_v2  ;;  %v1002_v19 = vpop.permute.xlu1 %1001 }
 0x46b   :  { %v1944_v3 = vpop.eup %1943 }
 0x46c   :  { %v764_v4 = vsel %vm266_vm2, %v1944_v3, 0.0 }
 0x46d   :  { %765 = vadd.xlane.f32.xlu0 %v764_v4 }
 0x483   :  { %923 = vrot.lane.b32.xlu0 %v2187_v17, %s2105_s18 }
 0x4f2   :  { %v763_v5 = vpop.xlane.xlu0 %762 }
 0x4f3   :  { %1945 = vrcp.f32 %v763_v5 }
 0x4f6   :  { %v766_v6 = vpop.xlane.xlu0 %765 }
 0x4f7   :  { %1947 = vrcp.f32 %v766_v6 }
 0x4fa   :  { %v924_v15 = vpop.permute.xlu0 %923 }
 0x500   :  { %v1946_v8 = vpop.eup %1945 }
 0x501   :  { %v768_v9 = vmul.f32 %v1946_v8, %v1942_v1 }
 0x503   :  { %1856 = vmatmul.mubr.msk.f32.vlgmr.msra.gmra.mxu0 %vm266_vm2, %v768_v9 }
 0x504   :  { %v1948_v10 = vpop.eup %1947  ;;  %1864 = vmatpush3.xpose.msk.msra.mxu0 %vm266_vm2, %v926_v7  ;;  %1865 = vmatprep.mubr.msk.f32.mxu0 %vm2101_vm1, %v2100_v12 }
 0x505   :  { %v770_v13 = vmul.f32 %v1948_v10, %v1944_v3  ;;  %1873 = vmatprep.subr.mxu0 %v2100_v12 }
 0x507   :  { %1861 = vmatmul.mubr.msk.f32.vlgmr.msra.gmra.mxu1 %vm266_vm2, %v770_v13  ;;  %1866 = vmatmul.mubr.msk.f32.vlgmr.msra.gmra.mxu0 %vm266_vm2, %v924_v15 }
 0x508   :  { %1869 = vmatpush3.xpose.msk.msra.mxu1 %vm266_vm2, %v1004_v11  ;;  %1870 = vmatprep.mubr.msk.f32.mxu1 %vm2101_vm1, %v2100_v12 }
 0x509   :  { %1878 = vmatprep.subr.mxu1 %v2100_v12  ;;  %1875 = vmatprep.mubr.msk.f32.mxu0 %vm2101_vm1, %v2100_v12 }
 0x50b   :  { %1871 = vmatmul.mubr.msk.f32.vlgmr.msra.gmra.mxu1 %vm266_vm2, %v1002_v19  ;;  %v1618_v19 = vld [vmem:[#allocation10 + $0x18] sm:$0xff] }
 0x50c   :  { %1880 = vmatprep.mubr.msk.f32.mxu1 %vm2101_vm1, %v2100_v12 }
 0x5c3   :  { %v2268_v20 = vpop.f32.mrf.mxu0 }
 0x5c5   :  { %v1857_v21 = vpop.f32.mrf.mxu0 }
 0x5c6   :  { %v1615_v21 = vld [vmem:[#allocation10] sm:$0xff] }
 0x5c7   :  { %v2270_v22 = vpop.f32.mrf.mxu1  ;;  %v997_v23 = vpop.f32.mrf.mxu0 }
 0x5c8   :  { %v1079_v24 = vsel %vm266_vm2, %v997_v23, -inf }
 0x5c9   :  { %1080 = vmax.xlane.f32.xlu0 %v1079_v24  ;;  %v1862_v25 = vpop.f32.mrf.mxu1  ;;  %v1867_v26 = vpop.f32.mrf.mxu0 }
 0x5cb   :  { %v1075_v27 = vpop.f32.mrf.mxu1 }
 0x5cc   :  { %v1082_v28 = vsel %vm266_vm2, %v1075_v27, -inf }
 0x5cd   :  { %1083 = vmax.xlane.f32.xlu1 %v1082_v28  ;;  %v1872_v29 = vpop.f32.mrf.mxu1 }
 0x5de   :  { %1177 = vrot.lane.b32.xlu1 %v2182_v14, %s2106_s19 }
 0x5df   :  { %1101 = vrot.lane.b32.xlu0 %v2185_v16, %s2106_s19 }
 0x5e2   :  { %1255 = vrot.lane.b32.xlu1 %v2185_v16, %s2107_s20 }
 0x5e6   :  { %1333 = vrot.lane.b32.xlu1 %v2182_v14, %s2107_s20 }
 0x5ea   :  { %1331 = vrot.lane.b32.xlu1 %v2200_v18, %s2107_s20 }
 0x652   :  { %v1081_v30 = vpop.xlane.xlu0 %1080 }
 0x653   :  { %v1085_v31 = vsub.f32 %v997_v23, %v1081_v30 }
 0x655   :  { %v1087_v32 = vmul.f32 1.442695, %v1085_v31 }
 0x656   :  { %v1102_v33 = vpop.permute.xlu0 %1101  ;;  %v1084_v34 = vpop.xlane.xlu1 %1083 }
 0x657   :  { %1949 = vpow2.f32 %v1087_v32  ;;  %v1086_v35 = vsub.f32 %v1075_v27, %v1084_v34  ;;  %1874 = vmatpush3.msra.mxu0 %v1102_v33 }
 0x658   :  { %1883 = vmatprep.subr.mxu0 %v2100_v12 }
 0x659   :  { %v1089_v36 = vmul.f32 1.442695, %v1086_v35 }
 0x65a   :  { %v1178_v37 = vpop.permute.xlu1 %1177 }
 0x65b   :  { %1951 = vpow2.f32 %v1089_v36  ;;  %1879 = vmatpush3.msra.mxu1 %v1178_v37 }
 0x65c   :  { %1888 = vmatprep.subr.mxu1 %v2100_v12 }
 0x65e   :  { %v1256_v43 = vpop.permute.xlu1 %1255 }
 0x662   :  { %v1334_v48 = vpop.permute.xlu1 %1333 }
 0x664   :  { %v1950_v38 = vpop.eup %1949 }
 0x665   :  { %v1091_v39 = vsel %vm266_vm2, %v1950_v38, 0.0 }
 0x666   :  { %1092 = vadd.xlane.f32.xlu0 %v1091_v39  ;;  %v1332_v51 = vpop.permute.xlu1 %1331 }
 0x668   :  { %v1952_v18 = vpop.eup %1951 }
 0x669   :  { %v1094_v40 = vsel %vm266_vm2, %v1952_v18, 0.0 }
 0x66a   :  { %1095 = vadd.xlane.f32.xlu0 %v1094_v40 }
 0x680   :  { %1253 = vrot.lane.b32.xlu0 %v2187_v17, %s2107_s20 }
 0x6ef   :  { %v1093_v41 = vpop.xlane.xlu0 %1092 }
 0x6f0   :  { %1953 = vrcp.f32 %v1093_v41 }
 0x6f3   :  { %v1096_v42 = vpop.xlane.xlu0 %1095 }
 0x6f4   :  { %1955 = vrcp.f32 %v1096_v42 }
 0x6f7   :  { %v1254_v17 = vpop.permute.xlu0 %1253 }
 0x6fd   :  { %v1954_v44 = vpop.eup %1953 }
 0x6fe   :  { %v1098_v45 = vmul.f32 %v1954_v44, %v1950_v38 }
 0x700   :  { %1876 = vmatmul.mubr.msk.f32.vlgmr.msra.gmra.mxu0 %vm266_vm2, %v1098_v45 }
 0x701   :  { %v1956_v46 = vpop.eup %1955  ;;  %1884 = vmatpush3.xpose.msk.msra.mxu0 %vm266_vm2, %v1256_v43  ;;  %1885 = vmatprep.mubr.msk.f32.mxu0 %vm2101_vm1, %v2100_v12 }
 0x702   :  { %v1100_v50 = vmul.f32 %v1956_v46, %v1952_v18  ;;  %1893 = vmatprep.subr.mxu0 %v2100_v12 }
 0x704   :  { %1881 = vmatmul.mubr.msk.f32.vlgmr.msra.gmra.mxu1 %vm266_vm2, %v1100_v50  ;;  %1886 = vmatmul.mubr.msk.f32.vlgmr.msra.gmra.mxu0 %vm266_vm2, %v1254_v17 }
 0x705   :  { %1889 = vmatpush3.xpose.msk.msra.mxu1 %vm266_vm2, %v1334_v48  ;;  %1890 = vmatprep.mubr.msk.f32.mxu1 %vm2101_vm1, %v2100_v12 }
 0x706   :  { %1898 = vmatprep.subr.mxu1 %v2100_v12  ;;  %1895 = vmatprep.mubr.msk.f32.mxu0 %vm2101_vm1, %v2100_v12 }
 0x708   :  { %1891 = vmatmul.mubr.msk.f32.vlgmr.msra.gmra.mxu1 %vm266_vm2, %v1332_v51 }
 0x709   :  { %1900 = vmatprep.mubr.msk.f32.mxu1 %vm2101_vm1, %v2100_v12 }
 0x7c0   :  { %v1173_v52 = vpop.f32.mrf.mxu0 }
 0x7c2   :  { %v1877_v53 = vpop.f32.mrf.mxu0 }
 0x7c4   :  { %v1249_v54 = vpop.f32.mrf.mxu1  ;;  %v1327_v55 = vpop.f32.mrf.mxu0 }
 0x7c5   :  { %v1409_v56 = vsel %vm266_vm2, %v1327_v55, -inf }
 0x7c6   :  { %1410 = vmax.xlane.f32.xlu0 %v1409_v56  ;;  %v1882_v57 = vpop.f32.mrf.mxu1  ;;  %v1887_v58 = vpop.f32.mrf.mxu0 }
 0x7c8   :  { %v1405_v59 = vpop.f32.mrf.mxu1 }
 0x7c9   :  { %v1412_v60 = vsel %vm266_vm2, %v1405_v59, -inf }
 0x7ca   :  { %1413 = vmax.xlane.f32.xlu1 %v1412_v60  ;;  %v1892_v61 = vpop.f32.mrf.mxu1 }
 0x7db   :  { %1507 = vrot.lane.b32.xlu1 %v2182_v14, %s2108_s21 }
 0x7df   :  { %1585 = vrot.lane.b32.xlu1 %v2268_v20, %s2096_s24  ;;  %v1617_v20 = vld [vmem:[#allocation10 + $0x10] sm:$0xff] }
 0x7e3   :  { %1587 = vrot.lane.b32.xlu1 %v2270_v22, %s2096_s24 }
 0x7e7   :  { %1595 = vrot.lane.b32.xlu1 %v1249_v54, %s2109_s22 }
 0x84f   :  { %v1411_v12 = vpop.xlane.xlu0 %1410 }
 0x850   :  { %v1415_v62 = vsub.f32 %v1327_v55, %v1411_v12 }
 0x852   :  { %v1417_v63 = vmul.f32 1.442695, %v1415_v62 }
 0x853   :  { %v1414_v0 = vpop.xlane.xlu1 %1413 }
 0x854   :  { %1957 = vpow2.f32 %v1417_v63  ;;  %v1416_v1 = vsub.f32 %v1405_v59, %v1414_v0 }
 0x856   :  { %v1419_v2 = vmul.f32 1.442695, %v1416_v1 }
 0x857   :  { %v1508_v3 = vpop.permute.xlu1 %1507 }
 0x858   :  { %1959 = vpow2.f32 %v1419_v2  ;;  %1899 = vmatpush3.msra.mxu1 %v1508_v3 }
 0x85b   :  { %v1586_v26 = vpop.permute.xlu1 %1585 }
 0x85c   :  { %v1607_v29 = vsel %vm266_vm2, %v2236_v47, %v1586_v26 }
 0x85f   :  { %v1588_v27 = vpop.permute.xlu1 %1587 }
 0x860   :  { %v1608_v34 = vsel %vm266_vm2, %v2238_v49, %v1588_v27 }
 0x861   :  { %v1958_v4 = vpop.eup %1957 }
 0x862   :  { %v1421_v14 = vsel %vm266_vm2, %v1958_v4, 0.0 }
 0x863   :  { %1422 = vadd.xlane.f32.xlu0 %v1421_v14  ;;  %v1596_v30 = vpop.permute.xlu1 %1595 }
 0x864   :  { %v1611_v35 = vsel %vm1609_vm4, %v1608_v34, %v1596_v30 }
 0x865   :  { %v1960_v5 = vpop.eup %1959 }
 0x866   :  { %v1424_v6 = vsel %vm266_vm2, %v1960_v5, 0.0 }
 0x867   :  { %1425 = vadd.xlane.f32.xlu0 %v1424_v6 }
 0x87d   :  { %1431 = vrot.lane.b32.xlu0 %v2185_v16, %s2108_s21  ;;  %v1616_v16 = vld [vmem:[#allocation10 + $0x8] sm:$0xff] }
 0x881   :  { %1593 = vrot.lane.b32.xlu0 %v1173_v52, %s2109_s22 }
 0x8ec   :  { %v1423_v7 = vpop.xlane.xlu0 %1422 }
 0x8ed   :  { %1961 = vrcp.f32 %v1423_v7 }
 0x8f0   :  { %v1426_v8 = vpop.xlane.xlu0 %1425 }
 0x8f1   :  { %1963 = vrcp.f32 %v1426_v8 }
 0x8f4   :  { %v1432_v9 = vpop.permute.xlu0 %1431 }
 0x8f5   :  { %1894 = vmatpush3.msra.mxu0 %v1432_v9 }
 0x8f6   :  { %1903 = vmatprep.subr.mxu0 %v1618_v19 }
 0x8f8   :  { %v1594_v28 = vpop.permute.xlu0 %1593 }
 0x8f9   :  { %v1610_v31 = vsel %vm1609_vm4, %v1607_v29, %v1594_v28 }
 0x8fa   :  { %v1962_v10 = vpop.eup %1961 }
 0x8fb   :  { %v1428_v11 = vmul.f32 %v1962_v10, %v1958_v4 }
 0x8fd   :  { %1896 = vmatmul.mubr.msk.f32.vlgmr.msra.gmra.mxu0 %vm266_vm2, %v1428_v11 }
 0x8fe   :  { %v1964_v13 = vpop.eup %1963  ;;  %1904 = vmatpush3.msra.mxu0 %v1618_v19 }
 0x8ff   :  { %v1430_v15 = vmul.f32 %v1964_v13, %v1960_v5  ;;  %1905 = vmatprep.subr.mxu0 %v1617_v20 }
 0x900   :  { %1906 = vmatpush3.msra.mxu0 %v1617_v20 }
 0x901   :  { %1901 = vmatmul.mubr.msk.f32.vlgmr.msra.gmra.mxu1 %vm266_vm2, %v1430_v15  ;;  %1907 = vmatprep.subr.mxu0 %v1616_v16 }
 0x902   :  { %1908 = vmatpush3.msra.mxu0 %v1616_v16 }
 0x903   :  { %1909 = vmatprep.subr.mxu0 %v1615_v21 }
 0x904   :  { %1910 = vmatpush3.msra.mxu0 %v1615_v21 }
 0x9bd   :  { %v1503_v22 = vpop.f32.mrf.mxu0 }
 0x9be   :  { %1601 = vrot.lane.b32.xlu0 %v1503_v22, %s2110_s25 }
 0x9bf   :  { %v1897_v23 = vpop.f32.mrf.mxu0 }
 0x9c1   :  { %v1579_v24 = vpop.f32.mrf.mxu1 }
 0x9c2   :  { %1603 = vrot.lane.b32.xlu1 %v1579_v24, %s2110_s25 }
 0x9c3   :  { %v1902_v25 = vpop.f32.mrf.mxu1 }
 0xa30   :  { %v1602_v32 = vpop.permute.xlu0 %1601 }
 0xa31   :  { %v1613_v33 = vsel %vm1612_vm3, %v1610_v31, %v1602_v32 }
 0xa32   :  { %1911 = vmatprep.mubr.msk.f32.mxu0 %vm97_vm0, %v1613_v33 }
 0xa34   :  { %v1604_v36 = vpop.permute.xlu1 %1603 }
 0xa35   :  { %v1614_v37 = vsel %vm1612_vm3, %v1611_v35, %v1604_v36 }
 0xa36   :  { %1912 = vmatmul.mubr.msk.f32.vlgmr.msra.gmra.mxu0 %vm97_vm0, %v1614_v37 }
 0xaf6   :  { %v1913_v38 = vpop.f32.mrf.mxu0 }
 0xaf7   :  { %1701 = vst.msk [vmem:[#allocation11 + $0x8] sm:$0xff] %vm97_vm0, %v1913_v38 }
 0xaf8   :  { %v1691_v47 = vpop.f32.mrf.mxu0 }
 0xaf9   :  { %1700 = vst.msk [vmem:[#allocation11] sm:$0xff] %vm97_vm0, %v1691_v47 }
 0xafa   :  { %2076 = shalt.err (!%p2073_p1)
}
 0xafb   :  { %1713 = dma.vmem_to_hbm [thread:$0]  %s1708_s27, 256, %s2331_s5, [#allocation4], %s2095_s23, %s2095_s23, %s2096_s24  }
 0xafc   :  { %2091 = dma.done.wait [#allocation4], 256  }
 0xafd   :  { %2092 = vsyncadd [#allocation4], 4294967040 }
 0xafe   :  { %1717 = vsyncpa [#allocation3], 1 }
 0xaff   :  { %1718 = vsyncpa [#allocation6], 1 }
 0xb00   :  { %1719 = vsyncpa [#allocation9], 1 }
 0xb01   :  { %1720 = vsyncpa [#allocation4], 1 }

</bundles_post_ra>
